<compile_context>
chip_gen: v5e
topology: v5e:2x2
jax: 0.10.0
libtpu: 0.0.40
codegen_flags: <defaults>
</compile_context>

<pallas_src>
import math

import jax
import jax.numpy as jnp
from jax.experimental import pallas as pl
from jax.experimental.pallas import tpu as pltpu


def _round_up(x, m):
    return ((x + m - 1) // m) * m


def _cdiv(a, b):
    return -(-a // b)


def _balanced_tile(dim, tile_max, align):
    """Tile <= ~tile_max that balances blocks over `dim` (avoids 2x pad waste).

    Returned tile is a multiple of `align`, so the (8,128) BlockSpec rule holds
    even when the block overhangs a ragged edge (Pallas masks the overhang).
    """
    nblocks = max(1, _cdiv(dim, tile_max))
    tile = _cdiv(dim, nblocks)
    return max(align, _round_up(tile, align))


def _pick_tk(kp, tk_max):
    """Largest multiple of 128 dividing kp (itself a multiple of 128), <= tk_max."""
    best = 128
    t = 128
    while t <= max(tk_max, 128) and t <= kp:
        if kp % t == 0:
            best = t
        t += 128
    return best


def _device_tile_defaults():
    """Generation-aware (tm, tn, tk_max, vmem_limit_bytes) defaults."""
    try:
        kind = jax.devices()[0].device_kind.lower()
    except Exception:
        kind = ""
    if "v7" in kind or "tpu7" in kind:
        # v7x: 64 MiB VMEM/TC + 3.2 TB/s HBM -> moderate tiles, leave headroom.
        return 512, 1024, 512, 48 * 1024 * 1024
    if "v6" in kind:
        # v6e: worst compute-to-bandwidth ratio -> largest tiles (128 MiB VMEM).
        return 512, 2048, 512, 64 * 1024 * 1024
    # v5e and anything else (scoped VMEM default is only 16 MiB -> raise it).
    return 512, 1024, 512, 48 * 1024 * 1024


def _linear_kernel_f32_out(x_ref, w_ref, b_ref, o_ref):
    """Accumulates directly into the f32 output block.

    The output block index is constant along the K grid axis, so o_ref stays
    resident in VMEM across all K steps -> no extra accumulator scratch and no
    finalize copy.
    """
    k = pl.program_id(2)

    @pl.when(k == 0)
    def _init():
        o_ref[...] = jnp.zeros_like(o_ref)

    o_ref[...] += jnp.dot(
        x_ref[...], w_ref[...], preferred_element_type=jnp.float32
    )

    @pl.when(k == pl.num_programs(2) - 1)
    def _finalize():
        o_ref[...] += b_ref[...]


def _linear_kernel_lowp_out(x_ref, w_ref, b_ref, o_ref, acc_ref):
    """f32 VMEM accumulator variant for low-precision (e.g. bf16) outputs."""
    k = pl.program_id(2)

    @pl.when(k == 0)
    def _init():
        acc_ref[...] = jnp.zeros_like(acc_ref)

    acc_ref[...] += jnp.dot(
        x_ref[...], w_ref[...], preferred_element_type=jnp.float32
    )

    @pl.when(k == pl.num_programs(2) - 1)
    def _finalize():
        o_ref[...] = (acc_ref[...] + b_ref[...]).astype(o_ref.dtype)


def linear_forward(x, weight_t, bias, *, tm=512, tn=1024, tk_max=512,
                   vmem_limit_bytes=48 * 1024 * 1024, out_dtype=None):
    """y = x @ weight_t + bias.

    x:        (..., K)
    weight_t: (Kw, N) pre-transposed weight; ideally Kw already zero-padded to a
              multiple of 128 at module init (then no weight copy happens here).
    bias:     (N,) or (1, N)
    """
    orig_shape = x.shape
    K = orig_shape[-1]
    Kw, N = weight_t.shape
    if out_dtype is None:
        out_dtype = x.dtype

    # Only K must be zero-padded (padded K columns contribute exactly 0 to the
    # dot). Ragged M / N edge blocks are masked by Pallas and only touch
    # rows/cols that are never written back, so no M/N pads and no output slice.
    Kp = _round_up(Kw, 128)
    if Kp != Kw:
        # Fallback for a non-pre-padded weight (module pre-pads, so normally a no-op).
        weight_t = jnp.pad(weight_t, ((0, Kp - Kw), (0, 0)))

    x2d = x.reshape(-1, K).astype(weight_t.dtype)
    M = x2d.shape[0]
    if Kp != K:
        x2d = jnp.pad(x2d, ((0, 0), (0, Kp - K)))

    bias2d = bias.reshape(1, N).astype(jnp.float32)

    # Balanced tile clamps (keep (8,128) alignment, avoid ragged-dim blowup).
    tm = _balanced_tile(M, tm, 8)
    tn = _balanced_tile(N, tn, 128)
    tk = _pick_tk(Kp, tk_max)

    grid = (pl.cdiv(M, tm), pl.cdiv(N, tn), Kp // tk)

    f32_out = jnp.dtype(out_dtype) == jnp.dtype(jnp.float32)
    kernel = _linear_kernel_f32_out if f32_out else _linear_kernel_lowp_out
    scratch = [] if f32_out else [pltpu.VMEM((tm, tn), jnp.float32)]

    in_itemsize = jnp.dtype(weight_t.dtype).itemsize
    out_itemsize = jnp.dtype(out_dtype).itemsize
    cost = pl.CostEstimate(
        flops=2 * M * N * Kp,
        transcendentals=0,
        bytes_accessed=(M * Kp + Kp * N) * in_itemsize
        + M * N * out_itemsize
        + N * 4,
    )

    out = pl.pallas_call(
        kernel,
        out_shape=jax.ShapeDtypeStruct((M, N), out_dtype),
        grid_spec=pltpu.PrefetchScalarGridSpec(
            num_scalar_prefetch=0,
            grid=grid,
            in_specs=[
                pl.BlockSpec((tm, tk), lambda i, j, k: (i, k)),   # x tile
                pl.BlockSpec((tk, tn), lambda i, j, k: (k, j)),   # W^T tile
                pl.BlockSpec((1, tn), lambda i, j, k: (0, j)),    # bias tile
            ],
            out_specs=pl.BlockSpec((tm, tn), lambda i, j, k: (i, j)),
            scratch_shapes=scratch,
        ),
        compiler_params=pltpu.CompilerParams(
            # TODO(synk): on v7x, verify in the profile that the grid is shared
            # across both TensorCores; if not, switch M/N to CORE_PARALLEL.
            dimension_semantics=("parallel", "parallel", "arbitrary"),
            vmem_limit_bytes=vmem_limit_bytes,
        ),
        cost_estimate=cost,
    )(x2d, weight_t, bias2d)

    return out.reshape(*orig_shape[:-1], N)


class LinearPallas:
    """JAX/Pallas port of the PyTorch `Linear` module (kaiming weight, zero bias)."""

    def __init__(self, in_features, out_features, dropout=0.0, key=None,
                 dtype=jnp.float32, compute_dtype=None,
                 tm=None, tn=None, tk=None, vmem_limit_bytes=None):
        if key is None:
            key = jax.random.PRNGKey(0)
        compute_dtype = dtype if compute_dtype is None else compute_dtype

        # reset_params: kaiming_normal_(weight) (fan_in, gain=sqrt(2)), bias=0.
        std = math.sqrt(2.0 / in_features)
        w = (std * jax.random.normal(
            key, (out_features, in_features), dtype=jnp.float32))

        # Keep ONLY the pre-transposed, K-padded weight (one-time cost at init;
        # forward never pays a transpose or a pad copy, and no duplicate weight).
        kp = _round_up(in_features, 128)
        w_t = jnp.zeros((kp, out_features), dtype=compute_dtype)
        w_t = w_t.at[:in_features, :].set(w.T.astype(compute_dtype))
        self.weight_t = w_t

        # constant_(bias, 0); pre-broadcast + f32 once (kernel adds bias in f32).
        self.bias = jnp.zeros((1, out_features), dtype=jnp.float32)

        self.in_features = in_features
        self.out_features = out_features
        self.dropout = dropout
        self.param_dtype = dtype

        d_tm, d_tn, d_tk, d_vmem = _device_tile_defaults()
        self.tm = tm if tm is not None else d_tm
        self.tn = tn if tn is not None else d_tn
        self.tk_max = tk if tk is not None else d_tk
        self.vmem_limit_bytes = (
            vmem_limit_bytes if vmem_limit_bytes is not None else d_vmem)
        # TODO(synk): training-mode dropout (p > 0) not implemented; forward
        # matches eval / p=0 behavior (identity), as in the original module.

    def __call__(self, x):
        return linear_forward(
            x, self.weight_t, self.bias,
            tm=self.tm, tn=self.tn, tk_max=self.tk_max,
            vmem_limit_bytes=self.vmem_limit_bytes,
        )


if __name__ == "__main__":
    key = jax.random.PRNGKey(0)
    k1, k2, k3, kx1, kx2, kx3 = jax.random.split(key, 6)

    # --- f32 module, small shapes (same as the original sanity check) ---------
    batch, in_features, out_features = 8, 32, 64
    mod = LinearPallas(in_features, out_features, dropout=0.0, key=k1)
    x = jax.random.normal(kx1, (batch, in_features), dtype=jnp.float32)
    y = mod(x)
    jax.block_until_ready(y)
    y_ref = x @ mod.weight_t[:in_features].astype(jnp.float32) + mod.bias[0]
    assert y.shape == (batch, out_features)
    assert jnp.allclose(y, y_ref, atol=1e-4, rtol=1e-4), float(
        jnp.max(jnp.abs(y - y_ref)))

    # --- ragged M/N + non-128 K + 3-D input: exercises masked edge blocks -----
    mod2 = LinearPallas(160, 200, key=k2)
    x2 = jax.random.normal(kx2, (2, 13, 160), dtype=jnp.float32)
    y2 = mod2(x2)
    jax.block_until_ready(y2)
    y2_ref = x2 @ mod2.weight_t[:160].astype(jnp.float32) + mod2.bias[0]
    assert y2.shape == (2, 13, 200)
    assert jnp.allclose(y2, y2_ref, atol=1e-3, rtol=1e-3), float(
        jnp.max(jnp.abs(y2 - y2_ref)))

    # --- bf16 compute path (bf16 weights/activations, f32 acc + f32 output) ---
    mod3 = LinearPallas(128, 256, key=k3, compute_dtype=jnp.bfloat16)
    x3 = jax.random.normal(kx3, (16, 128), dtype=jnp.float32)
    y3 = mod3(x3)
    jax.block_until_ready(y3)
    y3_ref = (x3.astype(jnp.bfloat16).astype(jnp.float32)
              @ mod3.weight_t[:128].astype(jnp.float32) + mod3.bias[0])
    assert y3.shape == (16, 256)
    assert jnp.allclose(y3, y3_ref, atol=5e-2, rtol=5e-2), float(
        jnp.max(jnp.abs(y3 - y3_ref)))

    print("KERNEL_OK")
</pallas_src>

<mosaic_0001>
module attributes {stable_mosaic.version = 11 : i64} {
  func.func @_linear_kernel_f32_out(%arg0: i32, %arg1: i32, %arg2: i32, %arg3: memref<8x128xf32, #tpu.memory_space<vmem>>, %arg4: memref<128x128xf32, #tpu.memory_space<vmem>>, %arg5: memref<1x128xf32, #tpu.memory_space<vmem>>, %arg6: memref<8x128xf32, #tpu.memory_space<vmem>>) attributes {dimension_semantics = [#tpu.dimension_semantics<parallel>, #tpu.dimension_semantics<parallel>, #tpu.dimension_semantics<arbitrary>], iteration_bounds = array<i64: 1, 1, 1>, scalar_prefetch = 0 : i64, scratch_operands = 0 : i64, tpu.core_type = #tpu.core_type<tc>, window_params = [{transform_indices = @transform_0, window_bounds = array<i64: 8, 128>}, {transform_indices = @transform_1, window_bounds = array<i64: 128, 128>}, {transform_indices = @transform_2, window_bounds = array<i64: 1, 128>}, {transform_indices = @transform_3, window_bounds = array<i64: 8, 128>}]} {
    %c0_i32 = arith.constant 0 : i32
    %0 = arith.cmpi eq, %arg2, %c0_i32 : i32
    %1 = arith.extui %0 : i1 to i32
    %c0_i32_0 = arith.constant 0 : i32
    %2 = arith.cmpi ne, %1, %c0_i32_0 : i32
    scf.if %2 {
      %cst_10 = arith.constant 0.000000e+00 : f32
      %12 = vector.broadcast %cst_10 : f32 to vector<8x128xf32>
      %c0_11 = arith.constant 0 : index
      %c0_12 = arith.constant 0 : index
      %13 = vector.load %arg6[%c0_11, %c0_12] : memref<8x128xf32, #tpu.memory_space<vmem>>, vector<8x128xf32>
      tpu.vector_store %arg6[%c0_11, %c0_12], %12 {strides = array<i32>} : memref<8x128xf32, #tpu.memory_space<vmem>>, vector<8x128xf32>,
    } else {
    }
    %c0 = arith.constant 0 : index
    %c0_1 = arith.constant 0 : index
    %3 = vector.load %arg6[%c0, %c0_1] : memref<8x128xf32, #tpu.memory_space<vmem>>, vector<8x128xf32>
    %c0_2 = arith.constant 0 : index
    %c0_3 = arith.constant 0 : index
    %4 = vector.load %arg3[%c0_2, %c0_3] : memref<8x128xf32, #tpu.memory_space<vmem>>, vector<8x128xf32>
    %c0_4 = arith.constant 0 : index
    %c0_5 = arith.constant 0 : index
    %5 = vector.load %arg4[%c0_4, %c0_5] : memref<128x128xf32, #tpu.memory_space<vmem>>, vector<128x128xf32>
    %cst = arith.constant dense<0.000000e+00> : vector<8x128xf32>
    %6 = tpu.matmul %4, %5, %cst {dimension_numbers = #tpu.dot_dimension_numbers<[1], [0], [0], [1], [0, 0, 1, 1], [], []>} : vector<8x128xf32>, vector<128x128xf32>, vector<8x128xf32> -> vector<8x128xf32>
    %7 = arith.addf %3, %6 : vector<8x128xf32>
    %c0_6 = arith.constant 0 : index
    %c0_7 = arith.constant 0 : index
    %8 = vector.load %arg6[%c0_6, %c0_7] : memref<8x128xf32, #tpu.memory_space<vmem>>, vector<8x128xf32>
    tpu.vector_store %arg6[%c0_6, %c0_7], %7 {strides = array<i32>} : memref<8x128xf32, #tpu.memory_space<vmem>>, vector<8x128xf32>,
    %c0_i32_8 = arith.constant 0 : i32
    %9 = arith.cmpi eq, %arg2, %c0_i32_8 : i32
    %10 = arith.extui %9 : i1 to i32
    %c0_i32_9 = arith.constant 0 : i32
    %11 = arith.cmpi ne, %10, %c0_i32_9 : i32
    scf.if %11 {
      %c0_10 = arith.constant 0 : index
      %c0_11 = arith.constant 0 : index
      %12 = vector.load %arg6[%c0_10, %c0_11] : memref<8x128xf32, #tpu.memory_space<vmem>>, vector<8x128xf32>
      %c0_12 = arith.constant 0 : index
      %c0_13 = arith.constant 0 : index
      %13 = vector.load %arg5[%c0_12, %c0_13] : memref<1x128xf32, #tpu.memory_space<vmem>>, vector<1x128xf32>
      %14 = vector.broadcast %13 : vector<1x128xf32> to vector<8x128xf32>
      %15 = arith.addf %12, %14 : vector<8x128xf32>
      %c0_14 = arith.constant 0 : index
      %c0_15 = arith.constant 0 : index
      %16 = vector.load %arg6[%c0_14, %c0_15] : memref<8x128xf32, #tpu.memory_space<vmem>>, vector<8x128xf32>
      tpu.vector_store %arg6[%c0_14, %c0_15], %15 {strides = array<i32>} : memref<8x128xf32, #tpu.memory_space<vmem>>, vector<8x128xf32>,
    } else {
    }
    return
  }
  func.func @transform_0(%arg0: i32, %arg1: i32, %arg2: i32) -> (i32, i32) {
    %c0_i32 = arith.constant 0 : i32
    return %arg0, %arg2 : i32, i32
  }
  func.func @transform_1(%arg0: i32, %arg1: i32, %arg2: i32) -> (i32, i32) {
    %c0_i32 = arith.constant 0 : i32
    return %arg2, %arg1 : i32, i32
  }
  func.func @transform_2(%arg0: i32, %arg1: i32, %arg2: i32) -> (i32, i32) {
    %c0_i32 = arith.constant 0 : i32
    %c0_i32_0 = arith.constant 0 : i32
    return %c0_i32, %arg1 : i32, i32
  }
  func.func @transform_3(%arg0: i32, %arg1: i32, %arg2: i32) -> (i32, i32) {
    %c0_i32 = arith.constant 0 : i32
    return %arg0, %arg1 : i32, i32
  }
}

</mosaic_0001>

<bundles_post_ra>
// kernel: tpu_custom_call.1
= control target key start
LH: loop header
LB: loop body
LE: loop exit
PB: predicated region body
PF: predicated region fallthrough
CT: control target
= control target key end

     0   :  { %s193_s0 = inlined_call_operand.vmem [shape: f32[8,128], index: 0, kind: input, shape index: {}]   ;;  %s194_s1 = inlined_call_operand.vmem [shape: f32[128,64], index: 1, kind: input, shape index: {}]   ;;  %s195_s2 = inlined_call_operand.vmem [shape: f32[1,64], index: 2, kind: input, shape index: {}]   ;;  %s196_s3 = inlined_call_operand.hbm [shape: f32[8,64], index: 3, kind: output, shape index: {}]  }
   0x1   :  { %v37_v0 = vld [vmem:[%s194_s1 + $0x78] sm:$0xff]  ;;  %v36_v1 = vld [vmem:[%s194_s1 + $0x70] sm:$0xff]  ;;  %v35_v2 = vld [vmem:[%s194_s1 + $0x68] sm:$0xff] }
   0x2   :  { %38 = vmatpush.msra.mxu0 %v37_v0  ;;  %v34_v3 = vld [vmem:[%s194_s1 + $0x60] sm:$0xff] }
   0x4   :  { %39 = vmatpush.msra.mxu0 %v36_v1 }
   0x6   :  { %40 = vmatpush.msra.mxu0 %v35_v2 }
   0x7   :  { %8 = vsyncpa [#allocation3], 0  ;;  %v33_v4 = vld [vmem:[%s194_s1 + $0x58] sm:$0xff]  ;;  %v32_v5 = vld [vmem:[%s194_s1 + $0x50] sm:$0xff]  ;;  %s115_s21 = smov [#allocation2]   ;;  %s77_s25 = sshll.u32 %s196_s3, 4  ;;  %s78_s25 = int_to_ptr.hbm [resolvable:$true] %s77_s25 }
   0x8   :  { %41 = vmatpush.msra.mxu0 %v34_v3  ;;  %v31_v6 = vld [vmem:[%s194_s1 + $0x48] sm:$0xff]  ;;  %v30_v7 = vld [vmem:[%s194_s1 + $0x40] sm:$0xff]  ;;  %v29_v8 = vld [vmem:[%s194_s1 + $0x38] sm:$0xff]  ;;  %s75_s22 = sshll.u32 %s115_s21, 4  ;;  %s76_s22 = int_to_ptr.vmem [resolvable:$true] %s75_s22 }
   0x9   :  { %v28_v9 = vld [vmem:[%s194_s1 + $0x30] sm:$0xff]  ;;  %v27_v10 = vld [vmem:[%s194_s1 + $0x28] sm:$0xff]  ;;  %v26_v11 = vld [vmem:[%s194_s1 + $0x20] sm:$0xff] }
   0xa   :  { %42 = vmatpush.msra.mxu0 %v33_v4  ;;  %v25_v12 = vld [vmem:[%s194_s1 + $0x18] sm:$0xff]  ;;  %v24_v13 = vld [vmem:[%s194_s1 + $0x10] sm:$0xff]  ;;  %v23_v14 = vld [vmem:[%s194_s1 + $0x8] sm:$0xff] }
   0xb   :  { %v22_v15 = vld [vmem:[%s194_s1] sm:$0xff] }
   0xc   :  { %43 = vmatpush.msra.mxu0 %v32_v5  ;;  %v21_v16 = vld [vmem:[%s193_s0] sm:$0xff] }
   0xd   :  { %v88_v17 = vld [vmem:[%s195_s2] ss:$0 sm:$0xff] }
   0xe   :  { %44 = vmatpush.msra.mxu0 %v31_v6 }
  0x10   :  { %45 = vmatpush.msra.mxu0 %v30_v7 }
  0x12   :  { %46 = vmatpush.msra.mxu0 %v29_v8 }
  0x14   :  { %47 = vmatpush.msra.mxu0 %v28_v9 }
  0x16   :  { %48 = vmatpush.msra.mxu0 %v27_v10 }
  0x18   :  { %49 = vmatpush.msra.mxu0 %v26_v11 }
  0x1a   :  { %50 = vmatpush.msra.mxu0 %v25_v12 }
  0x1c   :  { %51 = vmatpush.msra.mxu0 %v24_v13 }
  0x1e   :  { %52 = vmatpush.msra.mxu0 %v23_v14 }
  0x20   :  { %53 = vmatpush.msra.mxu0 %v22_v15 }
  0x21   :  { %54 = vmatmul.f32.vlgmr.msra.gmra.mxu0 %v21_v16 }
  0x9e   :  { %v55_v18 = vpop.f32.mrf.mxu0 }
  0x9f   :  { %v68_v19 = vadd.f32 %v88_v17, %v55_v18 }
  0xa1   :  { %69 = vst [vmem:[#allocation2] sm:$0xff] %v68_v19 }
  0xa2   :  { %80 = dma.vmem_to_hbm [thread:$0]  %s76_s22, 128, %s78_s25, [#allocation3]  }
  0xa3   :  { %113 = dma.done.wait [#allocation3], 128  }
  0xa4   :  { %114 = vsyncadd [#allocation3], 4294967168 }
  0xa5   :  { %85 = vsyncpa [#allocation3], 1 }

</bundles_post_ra>
